<compile_context>
chip_gen: v5e
topology: v5e:2x2
jax: 0.10.0
libtpu: 0.0.40
codegen_flags: <defaults>
</compile_context>

<pallas_src>
import functools

import numpy as np

import jax
import jax.numpy as jnp
from jax import lax
from jax.experimental import pallas as pl
from jax.experimental.pallas import tpu as pltpu


# ----------------------------------------------------------------------------- kernel

def _metrics_kernel(pf_ref, gf_ref, mod_ref, orig_ref, out_ref,
                    epe_acc, sse_acc, inter_acc, union_acc):
    """Fused per-row-tile metric partial sums (EPE / SSE-before / IOU counts).

    Block shapes:
      pf_ref, gf_ref    : (2, TR, W)  predicted / ground-truth flow (native dtype)
      mod_ref, orig_ref : (3, TR, W)  modified / original image     (native dtype)
      out_ref           : (1, 8, 128) f32, written once per core at the last step:
                          lane 0 = epe_sum, 1 = sse_before, 2 = iou_inter, 3 = iou_union
      *_acc             : (8, W) f32 VMEM scratch accumulators (per-core).
    """
    step = pl.program_id(1)

    @pl.when(step == 0)
    def _init():
        epe_acc[...] = jnp.zeros_like(epe_acc)
        sse_acc[...] = jnp.zeros_like(sse_acc)
        inter_acc[...] = jnp.zeros_like(inter_acc)
        union_acc[...] = jnp.zeros_like(union_acc)

    f32 = jnp.float32
    zero = f32(0.0)
    one = f32(1.0)
    thr2 = f32(0.25)                 # 0.5 ** 2 (no sqrt needed for the IOU masks)

    # Channel planes straight from the refs (no full (C,TR,W) intermediate), cast
    # in-kernel so narrow input dtypes stream at their native width.
    pu = pf_ref[0].astype(f32)       # (TR, W)
    pv = pf_ref[1].astype(f32)
    gu = gf_ref[0].astype(f32)
    gv = gf_ref[1].astype(f32)

    def fold8(x):
        # (TR, W) -> (8, W): sum over sublane groups of 8. The reshape preserves the
        # (8, 128) tile layout (pure view); the reduction is cross-vreg VPU adds, so
        # no XLU work happens in the steady-state loop.
        tr, w = x.shape
        return jnp.sum(x.reshape(tr // 8, 8, w), axis=0)

    # --- EPE partial: sum_p sqrt(sum_c (pf - gf)^2) ---
    du = pu - gu
    dv = pv - gv
    epe_acc[...] += fold8(jnp.sqrt(du * du + dv * dv))

    # --- SSE before warp (channel sum as explicit adds, stays 2-D) ---
    d0 = orig_ref[0].astype(f32) - mod_ref[0].astype(f32)
    d1 = orig_ref[1].astype(f32) - mod_ref[1].astype(f32)
    d2 = orig_ref[2].astype(f32) - mod_ref[2].astype(f32)
    sse_acc[...] += fold8(d0 * d0 + d1 * d1 + d2 * d2)

    # --- IOU counts from squared magnitudes (no sqrt, no float-equality) ---
    pm = jnp.where(pu * pu + pv * pv > thr2, one, zero)
    gm = jnp.where(gu * gu + gv * gv > thr2, one, zero)
    inter_acc[...] += fold8(pm * gm)
    union_acc[...] += fold8(jnp.maximum(pm, gm))

    # Final XLU reductions + single lane-dense output write, once per core.
    @pl.when(step == pl.num_programs(1) - 1)
    def _finalize():
        def total(acc):              # (8, W) -> (1, 1)
            return jnp.sum(jnp.sum(acc[...], axis=1, keepdims=True),
                           axis=0, keepdims=True)

        lane = lax.broadcasted_iota(jnp.int32, (1, 8, 128), 2)
        row = jnp.where(lane == 0, total(epe_acc), zero)
        row = row + jnp.where(lane == 1, total(sse_acc), zero)
        row = row + jnp.where(lane == 2, total(inter_acc), zero)
        row = row + jnp.where(lane == 3, total(union_acc), zero)
        out_ref[...] = row


# ----------------------------------------------------------------------------- wrapper

def _bilinear_warp(img, flow):
    """Backward bilinear warp with zero padding out-of-bounds.

    img: (3, H, W) f32; flow: (2, H, W) f32, channel 0 = x / width displacement.
    The 4-tap gather runs as XLA's native gather HLO; see TODO(synk) above.
    """
    C, H, W = img.shape
    u, v = flow[0], flow[1]
    jj = jnp.arange(W, dtype=jnp.float32)[None, :]
    ii = jnp.arange(H, dtype=jnp.float32)[:, None]
    sx = jj + u
    sy = ii + v
    x0 = jnp.floor(sx)
    y0 = jnp.floor(sy)
    fx = sx - x0
    fy = sy - y0
    x0i = x0.astype(jnp.int32)
    y0i = y0.astype(jnp.int32)
    img_flat = img.reshape(C, H * W)

    def tap(xi, yi, w):
        valid = (xi >= 0) & (xi < W) & (yi >= 0) & (yi < H)
        xc = jnp.clip(xi, 0, W - 1)
        yc = jnp.clip(yi, 0, H - 1)
        flat = (yc * W + xc).reshape(-1)
        vals = jnp.take(img_flat, flat, axis=1).reshape(C, H, W)
        return vals * jnp.where(valid, w, 0.0)[None]

    return (tap(x0i,     y0i,     (1.0 - fx) * (1.0 - fy))
            + tap(x0i + 1, y0i,     fx * (1.0 - fy))
            + tap(x0i,     y0i + 1, (1.0 - fx) * fy)
            + tap(x0i + 1, y0i + 1, fx * fy))


def _plan_tiling(pf, gf, mod, orig, requested=None):
    """Pick (tile_rows, num_parallel, steps_per_core, padded_H, vmem_limit_bytes)."""
    _, H, W = mod.shape
    itemsizes = [jnp.dtype(a.dtype).itemsize for a in (pf, gf, mod, orig)]
    # Sublane packing requirement: f32 -> 8 rows, bf16/f16 -> 16, (u)int8/fp8 -> 32.
    sub = max([32 // s for s in itemsizes] + [8])
    bytes_per_row = W * (2 * itemsizes[0] + 2 * itemsizes[1]
                         + 3 * itemsizes[2] + 3 * itemsizes[3])

    try:
        vmem_cap = int(getattr(pltpu.get_tpu_info(), "vmem_capacity_bytes",
                               64 * 1024 * 1024))
    except Exception:
        vmem_cap = 64 * 1024 * 1024
    # Double-buffered input footprint target: ~45% of physical VMEM
    # (~58 MiB on 128 MiB v5e/v6e, ~29 MiB on 64 MiB v7x), clamped to [8, 64] MiB.
    budget = min(max(int(vmem_cap * 0.45), 8 << 20), 64 << 20)
    vmem_limit = int(min(budget + (16 << 20), int(vmem_cap * 0.9)))

    def rup(x, m):
        return ((x + m - 1) // m) * m

    h_base = rup(H, sub)
    tr_cap = max((budget // (2 * bytes_per_row)) // sub * sub, sub)
    tr_cap = min(tr_cap, 2048)       # diminishing returns / keep fold unroll bounded

    tr = None
    h_pad = h_base
    if requested is not None:
        r = int(requested)
        if r > 0 and r % sub == 0 and H % r == 0:
            tr, h_pad = r, H         # exact fit, no padding
        # otherwise: ignore the request and auto-tile (never silently use tr = H)

    if tr is None:
        if h_base <= tr_cap:
            # Whole (padded) image fits the budget; split in two for v7x if legal.
            half = h_base // 2
            tr = half if (half >= sub and half % sub == 0) else h_base
        else:
            # Largest divisor of h_base in [tr_cap/2, tr_cap] that is a multiple of
            # `sub`; prefer an even step count so v7x can split across both cores.
            best, best_even = None, None
            lo = max(sub, (tr_cap // 2) // sub * sub)
            t = tr_cap
            while t >= lo:
                if h_base % t == 0:
                    if best is None:
                        best = t
                    if (h_base // t) % 2 == 0:
                        best_even = t
                        break
                t -= sub
            tr = best_even if best_even is not None else best
            if tr is None:           # rare: pad up (zero rows are metric-neutral)
                tr = tr_cap
                h_pad = rup(h_base, 2 * tr)

    s_total = h_pad // tr
    num_par = 2 if (s_total >= 2 and s_total % 2 == 0) else 1
    steps = s_total // num_par
    return tr, num_par, steps, h_pad, vmem_limit


def _psnr_from_mse(mse):
    safe = jnp.maximum(mse, jnp.float32(1e-30))
    val = 20.0 * jnp.log10(255.0 / jnp.sqrt(safe))
    return jnp.where(mse == 0.0, jnp.float32(100.0), val)


@functools.partial(jax.jit, static_argnames=("tile_rows",))
def evaluation_metrics(predict_flow, gt_flow, modified_img, original_img,
                       tile_rows=None):
    """predict_flow/gt_flow: (2, H, W); modified_img/original_img: (3, H, W)."""
    _, H, W = modified_img.shape
    N = H * W

    # --- SSE after warp: fused in XLA with the gather (warped image never hits HBM).
    pf_f = predict_flow.astype(jnp.float32)
    warped = _bilinear_warp(modified_img.astype(jnp.float32), pf_f)
    sse_after = jnp.sum((original_img.astype(jnp.float32) - warped) ** 2)

    # --- Everything else: one fused, tiled Pallas reduction over native-dtype inputs.
    tr, num_par, steps, h_pad, vmem_limit = _plan_tiling(
        predict_flow, gt_flow, modified_img, original_img, tile_rows)

    if h_pad != H:                   # zero rows are metric-neutral; means still use N
        pad = ((0, 0), (0, h_pad - H), (0, 0))
        pf_k = jnp.pad(predict_flow, pad)
        gf_k = jnp.pad(gt_flow, pad)
        mod_k = jnp.pad(modified_img, pad)
        orig_k = jnp.pad(original_img, pad)
    else:
        pf_k, gf_k, mod_k, orig_k = predict_flow, gt_flow, modified_img, original_img

    row_idx = lambda p, i: (0, p * steps + i, 0)
    flow_spec = pl.BlockSpec((2, tr, W), row_idx)
    img_spec = pl.BlockSpec((3, tr, W), row_idx)
    out_spec = pl.BlockSpec((1, 8, 128), lambda p, i: (p, 0, 0))

    sums = pl.pallas_call(
        _metrics_kernel,
        out_shape=jax.ShapeDtypeStruct((num_par, 8, 128), jnp.float32),
        grid=(num_par, steps),
        in_specs=[flow_spec, flow_spec, img_spec, img_spec],
        out_specs=out_spec,
        scratch_shapes=[pltpu.VMEM((8, W), jnp.float32)] * 4,
        compiler_params=pltpu.CompilerParams(
            dimension_semantics=("parallel", "arbitrary"),
            vmem_limit_bytes=vmem_limit),
    )(pf_k, gf_k, mod_k, orig_k)

    totals = jnp.sum(sums[:, 0, :], axis=0)          # (128,) sum over the 2 cores
    epe_sum, sse_before = totals[0], totals[1]
    inter, union = totals[2], totals[3]

    epe_v = epe_sum / jnp.float32(N)
    psnr_b = _psnr_from_mse(sse_before / jnp.float32(3 * N))
    psnr_a = _psnr_from_mse(sse_after / jnp.float32(3 * N))
    iou_v = jnp.where(union > 0.0, inter / jnp.maximum(union, 1.0), jnp.float32(0.0))
    return epe_v, psnr_b, psnr_a, iou_v


class EvaluationMetric:
    """JAX/Pallas port of prediction.metrics.EvaluationMetric.

    Metrics are kept as device scalars until inference() (no per-frame host sync);
    inference() pulls them to the host once.
    """

    def __init__(self):
        self.epes = []
        self.before_psnrs = []
        self.after_psnrs = []
        self.ious = []

    def forward(self, predict_flow, gt_flow, modified_img, original_img,
                tile_rows=None):
        epe_v, psnr_b, psnr_a, iou_v = evaluation_metrics(
            predict_flow, gt_flow, modified_img, original_img, tile_rows=tile_rows)
        self.epes.append(epe_v)
        self.before_psnrs.append(psnr_b)
        self.after_psnrs.append(psnr_a)
        self.ious.append(iou_v)

    __call__ = forward

    def inference(self):
        avg_epe = float(jnp.mean(jnp.stack(self.epes)))
        delta = float(jnp.mean(jnp.stack(self.after_psnrs))
                      - jnp.mean(jnp.stack(self.before_psnrs)))
        avg_iou = float(jnp.mean(jnp.stack(self.ious)))
        return avg_epe, delta, avg_iou


# ----------------------------------------------------------------------------- test

def _reference_metrics(pf, gf, mod, orig):
    """Pure-JAX reference mirroring the PyTorch epe/psnr/iou functions."""
    pf = pf.astype(jnp.float32)
    gf = gf.astype(jnp.float32)
    mod = mod.astype(jnp.float32)
    orig = orig.astype(jnp.float32)
    epe_v = jnp.mean(jnp.sqrt(jnp.sum((pf - gf) ** 2, axis=0)))
    warped = _bilinear_warp(mod, pf)
    psnr_b = _psnr_from_mse(jnp.mean((orig - mod) ** 2))
    psnr_a = _psnr_from_mse(jnp.mean((orig - warped) ** 2))
    pm = (jnp.sqrt(pf[0] ** 2 + pf[1] ** 2) > 0.5).astype(jnp.float32)
    gm = (jnp.sqrt(gf[0] ** 2 + gf[1] ** 2) > 0.5).astype(jnp.float32)
    inter = jnp.count_nonzero(pm + gm == 2.0).astype(jnp.float32)
    union = jnp.count_nonzero(pm + gm > 0.0).astype(jnp.float32)
    return epe_v, psnr_b, psnr_a, inter / union


if __name__ == "__main__":
    key = jax.random.PRNGKey(0)
    k1, k2, k3, k4 = jax.random.split(key, 4)

    # Main test: H=W=32 with explicit tile_rows=8 -> grid (2 parallel, 2 steps/core),
    # exercising the multi-step scratch accumulation and the parallel axis.
    H, W = 32, 32
    predict_flow = 2.0 * jax.random.normal(k1, (2, H, W), dtype=jnp.float32)
    gt_flow = 2.0 * jax.random.normal(k2, (2, H, W), dtype=jnp.float32)
    original_img = 255.0 * jax.random.uniform(k3, (3, H, W), dtype=jnp.float32)
    modified_img = jnp.clip(
        original_img + 10.0 * jax.random.normal(k4, (3, H, W), dtype=jnp.float32),
        0.0, 255.0)

    got = evaluation_metrics(predict_flow, gt_flow, modified_img, original_img,
                             tile_rows=8)
    jax.block_until_ready(got)
    want = _reference_metrics(predict_flow, gt_flow, modified_img, original_img)
    np.testing.assert_allclose(np.array(got), np.array(want), rtol=2e-4, atol=2e-3)

    # Auto tiling through the module API (16x16 frames -> two half-height tiles,
    # one per core on v7x; plain sequential reduction elsewhere).
    metric = EvaluationMetric()
    metric(predict_flow[:, :16, :16], gt_flow[:, :16, :16],
           modified_img[:, :16, :16], original_img[:, :16, :16])
    metric(predict_flow[:, 16:, 16:], gt_flow[:, 16:, 16:],
           modified_img[:, 16:, 16:], original_img[:, 16:, 16:])
    avg_epe, delta_psnr_val, avg_iou = metric.inference()
    assert np.isfinite([avg_epe, delta_psnr_val, avg_iou]).all()
    print("KERNEL_OK")
</pallas_src>

<mosaic_0001>
module attributes {stable_mosaic.version = 11 : i64} {
  func.func @_metrics_kernel(%arg0: i32, %arg1: i32, %arg2: memref<2x8x32xf32, #tpu.memory_space<vmem>>, %arg3: memref<2x8x32xf32, #tpu.memory_space<vmem>>, %arg4: memref<3x8x32xf32, #tpu.memory_space<vmem>>, %arg5: memref<3x8x32xf32, #tpu.memory_space<vmem>>, %arg6: memref<1x8x128xf32, #tpu.memory_space<vmem>>, %arg7: memref<8x32xf32, #tpu.memory_space<vmem>>, %arg8: memref<8x32xf32, #tpu.memory_space<vmem>>, %arg9: memref<8x32xf32, #tpu.memory_space<vmem>>, %arg10: memref<8x32xf32, #tpu.memory_space<vmem>>) attributes {dimension_semantics = [#tpu.dimension_semantics<parallel>, #tpu.dimension_semantics<arbitrary>], iteration_bounds = array<i64: 2, 2>, scalar_prefetch = 0 : i64, scratch_operands = 4 : i64, tpu.core_type = #tpu.core_type<tc>, window_params = [{transform_indices = @transform_0, window_bounds = array<i64: 2, 8, 32>}, {transform_indices = @transform_1, window_bounds = array<i64: 2, 8, 32>}, {transform_indices = @transform_2, window_bounds = array<i64: 3, 8, 32>}, {transform_indices = @transform_3, window_bounds = array<i64: 3, 8, 32>}, {transform_indices = @transform_4, window_bounds = array<i64: 1, 8, 128>}]} {
    %c0_i32 = arith.constant 0 : i32
    %0 = arith.cmpi eq, %arg1, %c0_i32 : i32
    %1 = arith.extui %0 : i1 to i32
    %c0_i32_0 = arith.constant 0 : i32
    %2 = arith.cmpi ne, %1, %c0_i32_0 : i32
    scf.if %2 {
      %cst_55 = arith.constant 0.000000e+00 : f32
      %78 = vector.broadcast %cst_55 : f32 to vector<8x32xf32>
      %c0_56 = arith.constant 0 : index
      %c0_57 = arith.constant 0 : index
      %79 = vector.load %arg7[%c0_56, %c0_57] : memref<8x32xf32, #tpu.memory_space<vmem>>, vector<8x32xf32>
      tpu.vector_store %arg7[%c0_56, %c0_57], %78 {strides = array<i32>} : memref<8x32xf32, #tpu.memory_space<vmem>>, vector<8x32xf32>,
      %cst_58 = arith.constant 0.000000e+00 : f32
      %80 = vector.broadcast %cst_58 : f32 to vector<8x32xf32>
      %c0_59 = arith.constant 0 : index
      %c0_60 = arith.constant 0 : index
      %81 = vector.load %arg8[%c0_59, %c0_60] : memref<8x32xf32, #tpu.memory_space<vmem>>, vector<8x32xf32>
      tpu.vector_store %arg8[%c0_59, %c0_60], %80 {strides = array<i32>} : memref<8x32xf32, #tpu.memory_space<vmem>>, vector<8x32xf32>,
      %cst_61 = arith.constant 0.000000e+00 : f32
      %82 = vector.broadcast %cst_61 : f32 to vector<8x32xf32>
      %c0_62 = arith.constant 0 : index
      %c0_63 = arith.constant 0 : index
      %83 = vector.load %arg9[%c0_62, %c0_63] : memref<8x32xf32, #tpu.memory_space<vmem>>, vector<8x32xf32>
      tpu.vector_store %arg9[%c0_62, %c0_63], %82 {strides = array<i32>} : memref<8x32xf32, #tpu.memory_space<vmem>>, vector<8x32xf32>,
      %cst_64 = arith.constant 0.000000e+00 : f32
      %84 = vector.broadcast %cst_64 : f32 to vector<8x32xf32>
      %c0_65 = arith.constant 0 : index
      %c0_66 = arith.constant 0 : index
      %85 = vector.load %arg10[%c0_65, %c0_66] : memref<8x32xf32, #tpu.memory_space<vmem>>, vector<8x32xf32>
      tpu.vector_store %arg10[%c0_65, %c0_66], %84 {strides = array<i32>} : memref<8x32xf32, #tpu.memory_space<vmem>>, vector<8x32xf32>,
    } else {
    }
    %c0 = arith.constant 0 : index
    %c0_1 = arith.constant 0 : index
    %c0_2 = arith.constant 0 : index
    %3 = vector.load %arg2[%c0, %c0_1, %c0_2] : memref<2x8x32xf32, #tpu.memory_space<vmem>>, vector<1x8x32xf32>
    %4 = vector.shape_cast %3 : vector<1x8x32xf32> to vector<8x32xf32>
    %c1 = arith.constant 1 : index
    %c0_3 = arith.constant 0 : index
    %c0_4 = arith.constant 0 : index
    %5 = vector.load %arg2[%c1, %c0_3, %c0_4] : memref<2x8x32xf32, #tpu.memory_space<vmem>>, vector<1x8x32xf32>
    %6 = vector.shape_cast %5 : vector<1x8x32xf32> to vector<8x32xf32>
    %c0_5 = arith.constant 0 : index
    %c0_6 = arith.constant 0 : index
    %c0_7 = arith.constant 0 : index
    %7 = vector.load %arg3[%c0_5, %c0_6, %c0_7] : memref<2x8x32xf32, #tpu.memory_space<vmem>>, vector<1x8x32xf32>
    %8 = vector.shape_cast %7 : vector<1x8x32xf32> to vector<8x32xf32>
    %c1_8 = arith.constant 1 : index
    %c0_9 = arith.constant 0 : index
    %c0_10 = arith.constant 0 : index
    %9 = vector.load %arg3[%c1_8, %c0_9, %c0_10] : memref<2x8x32xf32, #tpu.memory_space<vmem>>, vector<1x8x32xf32>
    %10 = vector.shape_cast %9 : vector<1x8x32xf32> to vector<8x32xf32>
    %11 = arith.subf %4, %8 : vector<8x32xf32>
    %12 = arith.subf %6, %10 : vector<8x32xf32>
    %c0_11 = arith.constant 0 : index
    %c0_12 = arith.constant 0 : index
    %13 = vector.load %arg7[%c0_11, %c0_12] : memref<8x32xf32, #tpu.memory_space<vmem>>, vector<8x32xf32>
    %14 = arith.mulf %11, %11 : vector<8x32xf32>
    %15 = arith.mulf %12, %12 : vector<8x32xf32>
    %16 = arith.addf %14, %15 : vector<8x32xf32>
    %17 = math.sqrt %16 : vector<8x32xf32>
    %18 = vector.shape_cast %17 : vector<8x32xf32> to vector<1x8x32xf32>
    %cst = arith.constant dense<0.000000e+00> : vector<8x32xf32>
    %19 = vector.multi_reduction <add>, %18, %cst [0] : vector<1x8x32xf32> to vector<8x32xf32>
    %20 = arith.addf %13, %19 : vector<8x32xf32>
    %c0_13 = arith.constant 0 : index
    %c0_14 = arith.constant 0 : index
    %21 = vector.load %arg7[%c0_13, %c0_14] : memref<8x32xf32, #tpu.memory_space<vmem>>, vector<8x32xf32>
    tpu.vector_store %arg7[%c0_13, %c0_14], %20 {strides = array<i32>} : memref<8x32xf32, #tpu.memory_space<vmem>>, vector<8x32xf32>,
    %c0_15 = arith.constant 0 : index
    %c0_16 = arith.constant 0 : index
    %c0_17 = arith.constant 0 : index
    %22 = vector.load %arg5[%c0_15, %c0_16, %c0_17] : memref<3x8x32xf32, #tpu.memory_space<vmem>>, vector<1x8x32xf32>
    %23 = vector.shape_cast %22 : vector<1x8x32xf32> to vector<8x32xf32>
    %c0_18 = arith.constant 0 : index
    %c0_19 = arith.constant 0 : index
    %c0_20 = arith.constant 0 : index
    %24 = vector.load %arg4[%c0_18, %c0_19, %c0_20] : memref<3x8x32xf32, #tpu.memory_space<vmem>>, vector<1x8x32xf32>
    %25 = vector.shape_cast %24 : vector<1x8x32xf32> to vector<8x32xf32>
    %26 = arith.subf %23, %25 : vector<8x32xf32>
    %c1_21 = arith.constant 1 : index
    %c0_22 = arith.constant 0 : index
    %c0_23 = arith.constant 0 : index
    %27 = vector.load %arg5[%c1_21, %c0_22, %c0_23] : memref<3x8x32xf32, #tpu.memory_space<vmem>>, vector<1x8x32xf32>
    %28 = vector.shape_cast %27 : vector<1x8x32xf32> to vector<8x32xf32>
    %c1_24 = arith.constant 1 : index
    %c0_25 = arith.constant 0 : index
    %c0_26 = arith.constant 0 : index
    %29 = vector.load %arg4[%c1_24, %c0_25, %c0_26] : memref<3x8x32xf32, #tpu.memory_space<vmem>>, vector<1x8x32xf32>
    %30 = vector.shape_cast %29 : vector<1x8x32xf32> to vector<8x32xf32>
    %31 = arith.subf %28, %30 : vector<8x32xf32>
    %c2 = arith.constant 2 : index
    %c0_27 = arith.constant 0 : index
    %c0_28 = arith.constant 0 : index
    %32 = vector.load %arg5[%c2, %c0_27, %c0_28] : memref<3x8x32xf32, #tpu.memory_space<vmem>>, vector<1x8x32xf32>
    %33 = vector.shape_cast %32 : vector<1x8x32xf32> to vector<8x32xf32>
    %c2_29 = arith.constant 2 : index
    %c0_30 = arith.constant 0 : index
    %c0_31 = arith.constant 0 : index
    %34 = vector.load %arg4[%c2_29, %c0_30, %c0_31] : memref<3x8x32xf32, #tpu.memory_space<vmem>>, vector<1x8x32xf32>
    %35 = vector.shape_cast %34 : vector<1x8x32xf32> to vector<8x32xf32>
    %36 = arith.subf %33, %35 : vector<8x32xf32>
    %c0_32 = arith.constant 0 : index
    %c0_33 = arith.constant 0 : index
    %37 = vector.load %arg8[%c0_32, %c0_33] : memref<8x32xf32, #tpu.memory_space<vmem>>, vector<8x32xf32>
    %38 = arith.mulf %26, %26 : vector<8x32xf32>
    %39 = arith.mulf %31, %31 : vector<8x32xf32>
    %40 = arith.addf %38, %39 : vector<8x32xf32>
    %41 = arith.mulf %36, %36 : vector<8x32xf32>
    %42 = arith.addf %40, %41 : vector<8x32xf32>
    %43 = vector.shape_cast %42 : vector<8x32xf32> to vector<1x8x32xf32>
    %cst_34 = arith.constant dense<0.000000e+00> : vector<8x32xf32>
    %44 = vector.multi_reduction <add>, %43, %cst_34 [0] : vector<1x8x32xf32> to vector<8x32xf32>
    %45 = arith.addf %37, %44 : vector<8x32xf32>
    %c0_35 = arith.constant 0 : index
    %c0_36 = arith.constant 0 : index
    %46 = vector.load %arg8[%c0_35, %c0_36] : memref<8x32xf32, #tpu.memory_space<vmem>>, vector<8x32xf32>
    tpu.vector_store %arg8[%c0_35, %c0_36], %45 {strides = array<i32>} : memref<8x32xf32, #tpu.memory_space<vmem>>, vector<8x32xf32>,
    %47 = arith.mulf %4, %4 : vector<8x32xf32>
    %48 = arith.mulf %6, %6 : vector<8x32xf32>
    %49 = arith.addf %47, %48 : vector<8x32xf32>
    %cst_37 = arith.constant 2.500000e-01 : f32
    %50 = vector.broadcast %cst_37 : f32 to vector<8x32xf32>
    %51 = arith.cmpf ogt, %49, %50 : vector<8x32xf32>
    %cst_38 = arith.constant 1.000000e+00 : f32
    %cst_39 = arith.constant 0.000000e+00 : f32
    %52 = vector.broadcast %cst_38 : f32 to vector<8x32xf32>
    %53 = vector.broadcast %cst_39 : f32 to vector<8x32xf32>
    %54 = arith.select %51, %52, %53 : vector<8x32xi1>, vector<8x32xf32>
    %55 = arith.mulf %8, %8 : vector<8x32xf32>
    %56 = arith.mulf %10, %10 : vector<8x32xf32>
    %57 = arith.addf %55, %56 : vector<8x32xf32>
    %cst_40 = arith.constant 2.500000e-01 : f32
    %58 = vector.broadcast %cst_40 : f32 to vector<8x32xf32>
    %59 = arith.cmpf ogt, %57, %58 : vector<8x32xf32>
    %cst_41 = arith.constant 1.000000e+00 : f32
    %cst_42 = arith.constant 0.000000e+00 : f32
    %60 = vector.broadcast %cst_41 : f32 to vector<8x32xf32>
    %61 = vector.broadcast %cst_42 : f32 to vector<8x32xf32>
    %62 = arith.select %59, %60, %61 : vector<8x32xi1>, vector<8x32xf32>
    %c0_43 = arith.constant 0 : index
    %c0_44 = arith.constant 0 : index
    %63 = vector.load %arg9[%c0_43, %c0_44] : memref<8x32xf32, #tpu.memory_space<vmem>>, vector<8x32xf32>
    %64 = arith.mulf %54, %62 : vector<8x32xf32>
    %65 = vector.shape_cast %64 : vector<8x32xf32> to vector<1x8x32xf32>
    %cst_45 = arith.constant dense<0.000000e+00> : vector<8x32xf32>
    %66 = vector.multi_reduction <add>, %65, %cst_45 [0] : vector<1x8x32xf32> to vector<8x32xf32>
    %67 = arith.addf %63, %66 : vector<8x32xf32>
    %c0_46 = arith.constant 0 : index
    %c0_47 = arith.constant 0 : index
    %68 = vector.load %arg9[%c0_46, %c0_47] : memref<8x32xf32, #tpu.memory_space<vmem>>, vector<8x32xf32>
    tpu.vector_store %arg9[%c0_46, %c0_47], %67 {strides = array<i32>} : memref<8x32xf32, #tpu.memory_space<vmem>>, vector<8x32xf32>,
    %c0_48 = arith.constant 0 : index
    %c0_49 = arith.constant 0 : index
    %69 = vector.load %arg10[%c0_48, %c0_49] : memref<8x32xf32, #tpu.memory_space<vmem>>, vector<8x32xf32>
    %70 = arith.maximumf %54, %62 : vector<8x32xf32>
    %71 = vector.shape_cast %70 : vector<8x32xf32> to vector<1x8x32xf32>
    %cst_50 = arith.constant dense<0.000000e+00> : vector<8x32xf32>
    %72 = vector.multi_reduction <add>, %71, %cst_50 [0] : vector<1x8x32xf32> to vector<8x32xf32>
    %73 = arith.addf %69, %72 : vector<8x32xf32>
    %c0_51 = arith.constant 0 : index
    %c0_52 = arith.constant 0 : index
    %74 = vector.load %arg10[%c0_51, %c0_52] : memref<8x32xf32, #tpu.memory_space<vmem>>, vector<8x32xf32>
    tpu.vector_store %arg10[%c0_51, %c0_52], %73 {strides = array<i32>} : memref<8x32xf32, #tpu.memory_space<vmem>>, vector<8x32xf32>,
    %c1_i32 = arith.constant 1 : i32
    %75 = arith.cmpi eq, %arg1, %c1_i32 : i32
    %76 = arith.extui %75 : i1 to i32
    %cst_53 = arith.constant 0.000000e+00 : f32
    %c0_i32_54 = arith.constant 0 : i32
    %77 = arith.cmpi ne, %76, %c0_i32_54 : i32
    scf.if %77 {
      %78 = tpu.iota {dimensions = array<i32: 2>} : vector<1x8x128xi32>
      %c0_i32_55 = arith.constant 0 : i32
      %79 = vector.broadcast %c0_i32_55 : i32 to vector<1x8x128xi32>
      %80 = arith.cmpi eq, %78, %79 : vector<1x8x128xi32>
      %c0_56 = arith.constant 0 : index
      %c0_57 = arith.constant 0 : index
      %81 = vector.load %arg7[%c0_56, %c0_57] : memref<8x32xf32, #tpu.memory_space<vmem>>, vector<8x32xf32>
      %cst_58 = arith.constant dense<0.000000e+00> : vector<8xf32>
      %82 = vector.multi_reduction <add>, %81, %cst_58 [1] : vector<8x32xf32> to vector<8xf32>
      %83 = vector.shape_cast %82 : vector<8xf32> to vector<8x1xf32>
      %cst_59 = arith.constant dense<0.000000e+00> : vector<1xf32>
      %84 = vector.multi_reduction <add>, %83, %cst_59 [0] : vector<8x1xf32> to vector<1xf32>
      %85 = vector.shape_cast %84 : vector<1xf32> to vector<1x1xf32>
      %86 = vector.shape_cast %85 : vector<1x1xf32> to vector<1x1x1xf32>
      %87 = vector.broadcast %86 : vector<1x1x1xf32> to vector<1x8x128xf32>
      %88 = vector.broadcast %cst_53 : f32 to vector<1x8x128xf32>
      %89 = arith.select %80, %87, %88 : vector<1x8x128xi1>, vector<1x8x128xf32>
      %c1_i32_60 = arith.constant 1 : i32
      %90 = vector.broadcast %c1_i32_60 : i32 to vector<1x8x128xi32>
      %91 = arith.cmpi eq, %78, %90 : vector<1x8x128xi32>
      %c0_61 = arith.constant 0 : index
      %c0_62 = arith.constant 0 : index
      %92 = vector.load %arg8[%c0_61, %c0_62] : memref<8x32xf32, #tpu.memory_space<vmem>>, vector<8x32xf32>
      %cst_63 = arith.constant dense<0.000000e+00> : vector<8xf32>
      %93 = vector.multi_reduction <add>, %92, %cst_63 [1] : vector<8x32xf32> to vector<8xf32>
      %94 = vector.shape_cast %93 : vector<8xf32> to vector<8x1xf32>
      %cst_64 = arith.constant dense<0.000000e+00> : vector<1xf32>
      %95 = vector.multi_reduction <add>, %94, %cst_64 [0] : vector<8x1xf32> to vector<1xf32>
      %96 = vector.shape_cast %95 : vector<1xf32> to vector<1x1xf32>
      %97 = vector.shape_cast %96 : vector<1x1xf32> to vector<1x1x1xf32>
      %98 = vector.broadcast %97 : vector<1x1x1xf32> to vector<1x8x128xf32>
      %99 = vector.broadcast %cst_53 : f32 to vector<1x8x128xf32>
      %100 = arith.select %91, %98, %99 : vector<1x8x128xi1>, vector<1x8x128xf32>
      %101 = arith.addf %89, %100 : vector<1x8x128xf32>
      %c2_i32 = arith.constant 2 : i32
      %102 = vector.broadcast %c2_i32 : i32 to vector<1x8x128xi32>
      %103 = arith.cmpi eq, %78, %102 : vector<1x8x128xi32>
      %c0_65 = arith.constant 0 : index
      %c0_66 = arith.constant 0 : index
      %104 = vector.load %arg9[%c0_65, %c0_66] : memref<8x32xf32, #tpu.memory_space<vmem>>, vector<8x32xf32>
      %cst_67 = arith.constant dense<0.000000e+00> : vector<8xf32>
      %105 = vector.multi_reduction <add>, %104, %cst_67 [1] : vector<8x32xf32> to vector<8xf32>
      %106 = vector.shape_cast %105 : vector<8xf32> to vector<8x1xf32>
      %cst_68 = arith.constant dense<0.000000e+00> : vector<1xf32>
      %107 = vector.multi_reduction <add>, %106, %cst_68 [0] : vector<8x1xf32> to vector<1xf32>
      %108 = vector.shape_cast %107 : vector<1xf32> to vector<1x1xf32>
      %109 = vector.shape_cast %108 : vector<1x1xf32> to vector<1x1x1xf32>
      %110 = vector.broadcast %109 : vector<1x1x1xf32> to vector<1x8x128xf32>
      %111 = vector.broadcast %cst_53 : f32 to vector<1x8x128xf32>
      %112 = arith.select %103, %110, %111 : vector<1x8x128xi1>, vector<1x8x128xf32>
      %113 = arith.addf %101, %112 : vector<1x8x128xf32>
      %c3_i32 = arith.constant 3 : i32
      %114 = vector.broadcast %c3_i32 : i32 to vector<1x8x128xi32>
      %115 = arith.cmpi eq, %78, %114 : vector<1x8x128xi32>
      %c0_69 = arith.constant 0 : index
      %c0_70 = arith.constant 0 : index
      %116 = vector.load %arg10[%c0_69, %c0_70] : memref<8x32xf32, #tpu.memory_space<vmem>>, vector<8x32xf32>
      %cst_71 = arith.constant dense<0.000000e+00> : vector<8xf32>
      %117 = vector.multi_reduction <add>, %116, %cst_71 [1] : vector<8x32xf32> to vector<8xf32>
      %118 = vector.shape_cast %117 : vector<8xf32> to vector<8x1xf32>
      %cst_72 = arith.constant dense<0.000000e+00> : vector<1xf32>
      %119 = vector.multi_reduction <add>, %118, %cst_72 [0] : vector<8x1xf32> to vector<1xf32>
      %120 = vector.shape_cast %119 : vector<1xf32> to vector<1x1xf32>
      %121 = vector.shape_cast %120 : vector<1x1xf32> to vector<1x1x1xf32>
      %122 = vector.broadcast %121 : vector<1x1x1xf32> to vector<1x8x128xf32>
      %123 = vector.broadcast %cst_53 : f32 to vector<1x8x128xf32>
      %124 = arith.select %115, %122, %123 : vector<1x8x128xi1>, vector<1x8x128xf32>
      %125 = arith.addf %113, %124 : vector<1x8x128xf32>
      %c0_73 = arith.constant 0 : index
      %c0_74 = arith.constant 0 : index
      %c0_75 = arith.constant 0 : index
      %126 = vector.load %arg6[%c0_73, %c0_74, %c0_75] : memref<1x8x128xf32, #tpu.memory_space<vmem>>, vector<1x8x128xf32>
      tpu.vector_store %arg6[%c0_73, %c0_74, %c0_75], %125 {strides = array<i32>} : memref<1x8x128xf32, #tpu.memory_space<vmem>>, vector<1x8x128xf32>,
    } else {
    }
    return
  }
  func.func @transform_0(%arg0: i32, %arg1: i32) -> (i32, i32, i32) {
    %c2_i32 = arith.constant 2 : i32
    %0 = arith.muli %arg0, %c2_i32 : i32
    %1 = arith.addi %0, %arg1 : i32
    %c0_i32 = arith.constant 0 : i32
    %c0_i32_0 = arith.constant 0 : i32
    %c0_i32_1 = arith.constant 0 : i32
    return %c0_i32, %1, %c0_i32_0 : i32, i32, i32
  }
  func.func @transform_1(%arg0: i32, %arg1: i32) -> (i32, i32, i32) {
    %c2_i32 = arith.constant 2 : i32
    %0 = arith.muli %arg0, %c2_i32 : i32
    %1 = arith.addi %0, %arg1 : i32
    %c0_i32 = arith.constant 0 : i32
    %c0_i32_0 = arith.constant 0 : i32
    %c0_i32_1 = arith.constant 0 : i32
    return %c0_i32, %1, %c0_i32_0 : i32, i32, i32
  }
  func.func @transform_2(%arg0: i32, %arg1: i32) -> (i32, i32, i32) {
    %c2_i32 = arith.constant 2 : i32
    %0 = arith.muli %arg0, %c2_i32 : i32
    %1 = arith.addi %0, %arg1 : i32
    %c0_i32 = arith.constant 0 : i32
    %c0_i32_0 = arith.constant 0 : i32
    %c0_i32_1 = arith.constant 0 : i32
    return %c0_i32, %1, %c0_i32_0 : i32, i32, i32
  }
  func.func @transform_3(%arg0: i32, %arg1: i32) -> (i32, i32, i32) {
    %c2_i32 = arith.constant 2 : i32
    %0 = arith.muli %arg0, %c2_i32 : i32
    %1 = arith.addi %0, %arg1 : i32
    %c0_i32 = arith.constant 0 : i32
    %c0_i32_0 = arith.constant 0 : i32
    %c0_i32_1 = arith.constant 0 : i32
    return %c0_i32, %1, %c0_i32_0 : i32, i32, i32
  }
  func.func @transform_4(%arg0: i32, %arg1: i32) -> (i32, i32, i32) {
    %c0_i32 = arith.constant 0 : i32
    %c0_i32_0 = arith.constant 0 : i32
    %c0_i32_1 = arith.constant 0 : i32
    return %arg0, %c0_i32, %c0_i32_0 : i32, i32, i32
  }
}

</mosaic_0001>

<bundles_post_ra>
// kernel: evaluation_metrics.1
= control target key start
LH: loop header
LB: loop body
LE: loop exit
PB: predicated region body
PF: predicated region fallthrough
CT: control target
= control target key end

     0   :  { %s915_s15 = smov 0   ;;  %s917_s16 = smov 0   ;;  %s1046_s0 = inlined_call_operand.vmem [shape: f32[2,32,32], index: 0, kind: input, shape index: {}]   ;;  %s1047_s1 = inlined_call_operand.vmem [shape: f32[2,32,32], index: 1, kind: input, shape index: {}]   ;;  %s1048_s2 = inlined_call_operand.vmem [shape: f32[3,32,32], index: 2, kind: input, shape index: {}]   ;;  %s1049_s3 = inlined_call_operand.vmem [shape: f32[3,32,32], index: 3, kind: input, shape index: {}]   ;;  %s1050_s4 = inlined_call_operand.vmem [shape: f32[2,8,128], index: 4, kind: output, shape index: {}]  }
   0x1   :  { %s919_s17 = smov 0   ;;  %s921_s18 = smov 0  }
   0x2   :  { %s923_s19 = smov 0   ;;  %s925_s20 = smov 0  }
   0x3   :  { %s927_s21 = smov 0  }
   0x4 LB: > { %s23_s22 = sadd.s32 1, %s878_s19  ;;  %s26_s23 = sadd.s32 1, %s882_s20  ;;  %s886_s21 = sphi %s927_s21, %s14_s21   ;;  %s882_s20 = sphi %s925_s20, %s1057_s20   ;;  %s878_s19 = sphi %s923_s19, %s1056_s19   ;;  %s874_s18 = sphi %s921_s18, %s1055_s18   ;;  %s870_s17 = sphi %s919_s17, %s1054_s17   ;;  %s866_s16 = sphi %s917_s16, %s1053_s16   ;;  %s862_s15 = sphi %s915_s15, %s1052_s15  }
   0x5   : > { %p24_p0 = scmp.ge.s32.totalorder %s23_s22, 2  ;;  %p44_p1 = scmp.ne.s32.totalorder %s866_s16, %s862_s15 }
   0x6   : > { %p45_p2 = scmp.eq.s32.totalorder %s886_s21, 0  ;;  %s735_s24 = sshll.u32 %s882_s20, 1 }
   0x7   : > { %s1059_s22 = smov (%p24_p0, %s23_s22), 0  ;;  %s1061_s23 = smov (!%p24_p0, %s26_s23), %s882_s20 }
   0x8   : > { %p28_p3 = scmp.ge.s32.totalorder %s1061_s23, 2  ;;  %p959_p4 = por %p45_p2, %p44_p1 }
   0x9   : > { %s966_s26 = sadd.s32 %s878_s19, %s735_s24  ;;  %s37_s30 = sadd.s32 1, %s866_s16 }
   0xa   : > { %s1063_s23 = smov (%p28_p3, %s1061_s23), 0  ;;  %p744_p6 = scmp.ge.s32.totalorder %s886_s21, 4 }
   0xb   : > { %s736_s27 = sshll.u32 %s1063_s23, 1 }
   0xc   : > { %s33_s28 = sadd.s32 %s736_s27, %s1059_s22  ;;  %186 = sbr.rel (%p744_p6) target bundleno = 43 (0x2b), region = 16 }
   0xd   : > { %s34_s29 = ssub.s32 %s966_s26, %s33_s28 }
   0xe   : > { %p35_p5 = scmp.eq.s32.totalorder %s34_s29, 0 }
  0x10   : > { %s973_s5 = scalar_select %p35_p5, %s866_s16, %s37_s30  }
  0x11   : > { %189 = sbr.rel (!%p959_p4) target bundleno = 23 (0x17), region = 20  ;;  %s191_s6 = sand.u32 (%p959_p4), 1, %s866_s16  }
  0x12   : > { %s747_s7 = sshll.u32 (%p959_p4), %s966_s26, 3  ;;  %s745_s8 = sshll.u32 (%p959_p4), %s191_s6, 4 }
  0x13   : > { %s197_s11 = scalar_lea.vmem (%p959_p4), %s1046_s0, %s747_s7  ;;  %s193_s12 = scalar_lea.vmem (%p959_p4), [#allocation6], %s745_s8 }
  0x14   : > { %v228_v0 = vld [vmem:[%s197_s11] sm:$0xff] (%p959_p4) }
  0x15   : > { %v230_v1 = vld [vmem:[%s197_s11 + $0x20] sm:$0xff] (%p959_p4)  ;;  %229 = vst [vmem:[%s193_s12] sm:$0xff] (%p959_p4), %v228_v0 }
  0x16   : > { %231 = vst [vmem:[%s193_s12 + $0x8] sm:$0xff] %v230_v1 }
  0x17 PF: > { %237 = sbr.rel (!%p959_p4) target bundleno = 29 (0x1d), region = 58  ;;  %s239_s13 = sand.u32 (%p959_p4), 1, %s866_s16  }
  0x18   : > { %s750_s14 = sshll.u32 (%p959_p4), %s966_s26, 3  ;;  %s748_s24 = sshll.u32 (%p959_p4), %s239_s13, 4 }
  0x19   : > { %s245_s29 = scalar_lea.vmem (%p959_p4), %s1047_s1, %s750_s14  ;;  %s241_s30 = scalar_lea.vmem (%p959_p4), [#allocation7], %s748_s24 }
  0x1a   : > { %v276_v2 = vld [vmem:[%s245_s29] sm:$0xff] (%p959_p4) }
  0x1b   : > { %v278_v3 = vld [vmem:[%s245_s29 + $0x20] sm:$0xff] (%p959_p4)  ;;  %277 = vst [vmem:[%s241_s30] sm:$0xff] (%p959_p4), %v276_v2 }
  0x1c   : > { %279 = vst [vmem:[%s241_s30 + $0x8] sm:$0xff] %v278_v3 }
  0x1d PF: > { %285 = sbr.rel (!%p959_p4) target bundleno = 36 (0x24), region = 96  ;;  %s287_s6 = sand.u32 (%p959_p4), 1, %s866_s16  }
  0x1e   : > { %s752_s7 = sshll.u32 (%p959_p4), %s966_s26, 3  ;;  %s769_s8 = smul.u32 (%p959_p4), 24, %s287_s6 }
  0x1f   : > { %s293_s11 = scalar_lea.vmem (%p959_p4), %s1048_s2, %s752_s7 }
  0x20   : > { %v326_v4 = vld [vmem:[%s293_s11] sm:$0xff] (%p959_p4)  ;;  %s289_s12 = scalar_lea.vmem (%p959_p4), [#allocation8], %s769_s8 }
  0x21   : > { %v328_v5 = vld [vmem:[%s293_s11 + $0x20] sm:$0xff] (%p959_p4)  ;;  %327 = vst [vmem:[%s289_s12] sm:$0xff] (%p959_p4), %v326_v4 }
  0x22   : > { %v330_v6 = vld [vmem:[%s293_s11 + $0x40] sm:$0xff]  ;;  %329 = vst [vmem:[%s289_s12 + $0x8] sm:$0xff] %v328_v5 }
  0x23   : > { %331 = vst [vmem:[%s289_s12 + $0x10] sm:$0xff] %v330_v6 }
  0x24 PF: > { %337 = sbr.rel (!%p959_p4) target bundleno = 43 (0x2b), region = 134  ;;  %s339_s13 = sand.u32 (%p959_p4), 1, %s866_s16  }
  0x25   : > { %s754_s14 = sshll.u32 (%p959_p4), %s966_s26, 3  ;;  %s770_s24 = smul.u32 (%p959_p4), 24, %s339_s13 }
  0x26   : > { %s345_s29 = scalar_lea.vmem (%p959_p4), %s1049_s3, %s754_s14 }
  0x27   : > { %v378_v7 = vld [vmem:[%s345_s29] sm:$0xff] (%p959_p4)  ;;  %s341_s30 = scalar_lea.vmem (%p959_p4), [#allocation9], %s770_s24 }
  0x28   : > { %v380_v8 = vld [vmem:[%s345_s29 + $0x20] sm:$0xff] (%p959_p4)  ;;  %379 = vst [vmem:[%s341_s30] sm:$0xff] (%p959_p4), %v378_v7 }
  0x29   : > { %v382_v9 = vld [vmem:[%s345_s29 + $0x40] sm:$0xff]  ;;  %381 = vst [vmem:[%s341_s30 + $0x8] sm:$0xff] %v380_v8 }
  0x2a   : > { %383 = vst [vmem:[%s341_s30 + $0x10] sm:$0xff] %v382_v9 }
  0x2b PF: > { %p755_p7 = scmp.ge.s32.totalorder %s886_s21, 1  ;;  %p388_p8 = scmp.lt.s32.totalorder %s886_s21, 5 }
  0x2d   : > { %p389_p9 = pnand %p755_p7, %p388_p8 }
  0x2e   : > { %s395_s25 = sand.u32 (!%p389_p9), 1, %s862_s15   ;;  %p460_p10 = scmp.lt.s32.totalorder (!%p389_p9), %s874_s18, 1 }
  0x2f   : > { %392 = sbr.rel (%p389_p9) target bundleno = 246 (0xf6), region = 172  ;;  %s756_s26 = sshll.u32 (!%p389_p9), %s395_s25, 4 }
  0x30   : > { %s771_s6 = smul.u32 (!%p389_p9), 24, %s395_s25  ;;  %s397_s11 = scalar_lea.vmem (!%p389_p9), [#allocation6], %s756_s26 }
  0x31   : > { %s404_s12 = scalar_lea.vmem (!%p389_p9), [#allocation7], %s756_s26  ;;  %p759_p11 = scmp.ne.s32.totalorder (!%p389_p9), %s870_s17, 0 }
  0x32   : > { %s411_s13 = scalar_lea.vmem (!%p389_p9), [#allocation8], %s771_s6  ;;  %s418_s14 = scalar_lea.vmem (!%p389_p9), [#allocation9], %s771_s6 }
  0x34   : > { %s1065_s18 = smov (!%p460_p10, %s874_s18), 1  ;;  %467 = sbr.rel (%p759_p11) target bundleno = 62 (0x3e), region = 192 }
  0x35   : > { %s758_s7 = sshll.u32 %s1065_s18, 3 }
  0x36   : > { %s1012_s10 = scalar_lea.vmem %s1050_s4, %s758_s7 }
  0x39   : > { %vm468_vm0 = vcmask 261120   ;;  %v888_v10 = vmov 0.0  }
  0x3a   : > { %469 = vst.msk [vmem:[#allocation2] sm:$0xff] %vm468_vm0, %v888_v10 }
  0x3b   : > { %470 = vst.msk [vmem:[#allocation3] sm:$0xff] %vm468_vm0, %v888_v10 }
  0x3c   : > { %471 = vst.msk [vmem:[#allocation4] sm:$0xff] %vm468_vm0, %v888_v10 }
  0x3d   : > { %472 = vst.msk [vmem:[#allocation5] sm:$0xff] %vm468_vm0, %v888_v10 }
  0x3e PF: > { %v473_v11 = vld [vmem:[%s397_s11] sm:$0xff]  ;;  %v760_v12 = vld [vmem:[%s397_s11 + $0x8] sm:$0xff]  ;;  %v501_v16 = vld [vmem:[%s418_s14] sm:$0xff]  ;;  %v889_v38 = vmov 0.0   ;;  %vm499_vm3 = vcmask 261120   ;;  %p766_p12 = scmp.ne.s32.totalorder %s870_s17, 1 }
  0x3f   : > { %v476_v13 = vld [vmem:[%s404_s12] sm:$0xff]  ;;  %v761_v14 = vld [vmem:[%s404_s12 + $0x8] sm:$0xff]  ;;  %v523_v17 = vmul.f32 %v473_v11, %v473_v11  ;;  %v524_v18 = vmul.f32 %v760_v12, %v760_v12  ;;  %v765_v29 = vld [vmem:[%s411_s13 + $0x10] sm:$0xff] }
  0x40   : > { %v479_v15 = vsub.f32 %v473_v11, %v476_v13  ;;  %v528_v19 = vmul.f32 %v476_v13, %v476_v13  ;;  %v480_v20 = vsub.f32 %v760_v12, %v761_v14  ;;  %v502_v21 = vld [vmem:[%s411_s13] sm:$0xff]  ;;  %v762_v22 = vld [vmem:[%s418_s14 + $0x8] sm:$0xff]  ;;  %v763_v23 = vld [vmem:[%s411_s13 + $0x8] sm:$0xff]  ;;  %v529_v24 = vmul.f32 %v761_v14, %v761_v14 }
  0x41   : > { %v503_v26 = vsub.f32 %v501_v16, %v502_v21  ;;  %v508_v27 = vsub.f32 %v762_v22, %v763_v23  ;;  %v764_v28 = vld [vmem:[%s418_s14 + $0x10] sm:$0xff]  ;;  %v525_v30 = vadd.f32 %v524_v18, %v523_v17 }
  0x42   : > { %v482_v25 = vmul.f32 %v479_v15, %v479_v15  ;;  %v483_v31 = vmul.f32 %v480_v20, %v480_v20  ;;  %v513_v32 = vsub.f32 %v764_v28, %v765_v29  ;;  %v530_v33 = vadd.f32 %v529_v24, %v528_v19  ;;  %v514_v42 = vld [vmem:[#allocation3] sm:$0xff]  ;;  %v481_v59 = vld [vmem:[#allocation2] sm:$0xff] }
  0x43   : > { %v515_v34 = vmul.f32 %v503_v26, %v503_v26  ;;  %v516_v35 = vmul.f32 %v508_v27, %v508_v27  ;;  %vm526_vm1 = vcmp.gt.f32.partialorder %v525_v30, 0.25  ;;  %v533_v43 = vld [vmem:[#allocation4] sm:$0xff] }
  0x44   : > { %v484_v36 = vadd.f32 %v483_v31, %v482_v25  ;;  %v518_v37 = vmul.f32 %v513_v32, %v513_v32  ;;  %v527_v39 = vsel %vm526_vm1, 1.0, %v889_v38  ;;  %vm531_vm2 = vcmp.gt.f32.partialorder %v530_v33, 0.25  ;;  %v538_v44 = vld [vmem:[#allocation5] sm:$0xff] }
  0x45   : > { %v517_v40 = vadd.f32 %v516_v35, %v515_v34  ;;  %v532_v41 = vsel %vm531_vm2, 1.0, %v889_v38 }
  0x46   : > { %830 = vrsqrt.f32 %v484_v36  ;;  %v534_v46 = vmul.f32 %v532_v41, %v527_v39  ;;  %v539_v47 = vmax.f32 %v527_v39, %v532_v41  ;;  %vm492_vm4 = vcmp.eq.f32.partialorder %v484_v36, inf }
  0x47   : > { %v519_v45 = vadd.f32 %v518_v37, %v517_v40  ;;  %v495_v57 = vand.u32 2147483648, %v484_v36  ;;  %vm494_vm5 = vcmp.eq.f32.partialorder %v484_v36, 0.0 }
  0x48   : > { %v536_v49 = vadd.f32 %v534_v46, %v533_v43  ;;  %v541_v50 = vadd.f32 %v539_v47, %v538_v44 }
  0x49   : > { %v521_v48 = vadd.f32 %v519_v45, %v514_v42 }
  0x4a   : > { %537 = vst.msk [vmem:[#allocation4] sm:$0xff] %vm499_vm3, %v536_v49 }
  0x4b   : > { %522 = vst.msk [vmem:[#allocation3] sm:$0xff] %vm499_vm3, %v521_v48 }
  0x4c   : > { %v831_v51 = vpop.eup %830  ;;  %542 = vst.msk [vmem:[#allocation5] sm:$0xff] %vm499_vm3, %v541_v50 }
  0x4d   : > { %v486_v52 = vmul.f32 %v831_v51, %v484_v36 }
  0x4f   : > { %v487_v53 = vmul.f32 %v831_v51, %v486_v52 }
  0x51   : > { %v488_v54 = vmul.f32 0.5, %v487_v53 }
  0x53   : > { %v489_v55 = vsub.f32 1.5, %v488_v54 }
  0x55   : > { %v490_v56 = vmul.f32 %v831_v51, %v489_v55 }
  0x57   : > { %v491_v58 = vmul.f32 %v490_v56, %v484_v36 }
  0x59   : > { %v493_v60 = vsel %vm492_vm4, %v484_v36, %v491_v58  ;;  %546 = sbr.rel (%p766_p12) target bundleno = 246 (0xf6), region = 196 }
  0x5a   : > { %v496_v61 = vsel %vm494_vm5, %v495_v57, %v493_v60 }
  0x5b   : > { %v498_v62 = vadd.f32 %v496_v61, %v481_v59 }
  0x5d   : > { %500 = vst.msk [vmem:[#allocation2] sm:$0xff] %vm499_vm3, %v498_v62 }
  0x5e   : > { %v575_v63 = vld [vmem:[#allocation4] sm:$0xff]  ;;  %v588_v3 = vld [vmem:[#allocation5] sm:$0xff]  ;;  %v562_v4 = vld [vmem:[#allocation3] sm:$0xff]  ;;  %v547_v20 = vlaneseq }
  0x5f   : > { %v576_v1 = vsel %vm499_vm3, %v575_v63, 0.0  ;;  %v589_v5 = vsel %vm499_vm3, %v588_v3, 0.0  ;;  %v563_v6 = vsel %vm499_vm3, %v562_v4, 0.0 }
  0x60   : > { %577 = vadd.xlane.f32.xlu1 %v576_v1  ;;  %v548_v27 = vand.u32 127, %v547_v20 }
  0x62   : > { %vm549_vm6 = vcmp.eq.s32.totalorder %v548_v27, 0  ;;  %vm561_vm7 = vcmp.eq.s32.totalorder %v548_v27, 1  ;;  %vm574_vm8 = vcmp.eq.s32.totalorder %v548_v27, 2  ;;  %vm587_vm9 = vcmp.eq.s32.totalorder %v548_v27, 3 }
  0x64   : > { %v550_v0 = vld [vmem:[#allocation2] sm:$0xff] }
  0x65   : > { %v551_v2 = vsel %vm499_vm3, %v550_v0, 0.0 }
  0x66   : > { %552 = vadd.xlane.f32.xlu0 %v551_v2 }
  0x68   : > { %590 = vadd.xlane.f32.xlu1 %v589_v5 }
  0x6e   : > { %564 = vadd.xlane.f32.xlu0 %v563_v6 }
  0xd3   : > { %v578_v7 = vpop.xlane.xlu1 %577 }
  0xd4   : > { %v579_v9 = vrot.slane %v578_v7, 4 }
  0xd6   : > { %v580_v11 = vadd.f32 %v579_v9, %v578_v7 }
  0xd8   : > { %v581_v14 = vrot.slane %v580_v11, 2 }
  0xd9   : > { %v553_v8 = vpop.xlane.xlu0 %552 }
  0xda   : > { %v554_v10 = vrot.slane %v553_v8, 4  ;;  %v582_v21 = vadd.f32 %v581_v14, %v580_v11 }
  0xdb   : > { %v591_v15 = vpop.xlane.xlu1 %590 }
  0xdc   : > { %v555_v12 = vadd.f32 %v554_v10, %v553_v8  ;;  %v592_v18 = vrot.slane %v591_v15, 4  ;;  %v583_v28 = vrot.slane %v582_v21, 1 }
  0xde   : > { %v556_v13 = vrot.slane %v555_v12, 2  ;;  %v593_v22 = vadd.f32 %v592_v18, %v591_v15  ;;  %v584_v34 = vadd.f32 %v583_v28, %v582_v21 }
  0xe0   : > { %v557_v17 = vadd.f32 %v556_v13, %v555_v12  ;;  %v594_v25 = vrot.slane %v593_v22, 2  ;;  %v585_v40 = vsel %vm574_vm8, %v584_v34, 0.0 }
  0xe1   : > { %v565_v16 = vpop.xlane.xlu0 %564 }
  0xe2   : > { %v566_v19 = vrot.slane %v565_v16, 4  ;;  %v558_v24 = vrot.slane %v557_v17, 1  ;;  %v595_v29 = vadd.f32 %v594_v25, %v593_v22 }
  0xe4   : > { %v567_v23 = vadd.f32 %v566_v19, %v565_v16  ;;  %v559_v31 = vadd.f32 %v558_v24, %v557_v17  ;;  %v596_v32 = vrot.slane %v595_v29, 1 }
  0xe6   : > { %v568_v26 = vrot.slane %v567_v23, 2  ;;  %v560_v36 = vsel %vm549_vm6, %v559_v31, 0.0  ;;  %v597_v37 = vadd.f32 %v596_v32, %v595_v29 }
  0xe8   : > { %v569_v30 = vadd.f32 %v568_v26, %v567_v23  ;;  %v598_v42 = vsel %vm587_vm9, %v597_v37, 0.0 }
  0xea   : > { %v570_v33 = vrot.slane %v569_v30, 1 }
  0xec   : > { %v571_v35 = vadd.f32 %v570_v33, %v569_v30 }
  0xee   : > { %v572_v38 = vsel %vm561_vm7, %v571_v35, 0.0 }
  0xef   : > { %v573_v39 = vadd.f32 %v572_v38, %v560_v36 }
  0xf1   : > { %v586_v41 = vadd.f32 %v585_v40, %v573_v39 }
  0xf3   : > { %v599_v43 = vadd.f32 %v598_v42, %v586_v41 }
  0xf5   : > { %600 = vst [vmem:[%s1012_s10] sm:$0xff] %v599_v43 }
  0xf6 PF: > { %s14_s21 = sadd.s32 1, %s886_s21   ;;  %s1052_s15 = smov %s866_s16 }
  0xf7   : > { %p11_p13 = scmp.ge.s32.totalorder %s14_s21, 6   ;;  %s1053_s16 = smov %s973_s5 }
  0xf8   : > { %s1054_s17 = smov %s878_s19  ;;  %s1055_s18 = smov %s882_s20 }
  0xf9   : > { %s1056_s19 = smov %s1059_s22  ;;  %s1057_s20 = smov %s1063_s23 }
  0xfa   :  { %13 = sbr.rel (!%p11_p13) target bundleno = 4 (0x4), region = 261 }

</bundles_post_ra>
